<compile_context>
chip_gen: v7x
topology: tpu7x:2x2x1
jax: 0.10.0
libtpu: 0.0.40
codegen_flags: <defaults>
</compile_context>

<pallas_src>
import jax
import jax.numpy as jnp
from jax.experimental import pallas as pl
from jax.experimental.pallas import tpu as pltpu


# ---------------------------------------------------------------------------
# Generation-aware sizing
# ---------------------------------------------------------------------------
def _gen_aware_budgets():
    """Return (per-operand block byte target, vmem_limit_bytes).

    64-MiB-VMEM parts (v7x): 4 MiB blocks, 32 MiB scoped limit
    128-MiB-VMEM parts (v5e/v6e): 8 MiB blocks, 64 MiB scoped limit
    (3 streams x 2 pipeline buffers stays well inside the limit either way.)
    """
    vmem = None
    try:
        info = pltpu.get_tpu_info()
        vmem = getattr(info, "vmem_capacity_bytes", None)
    except Exception:
        vmem = None
    if vmem is None or vmem <= (64 << 20):
        return 4 << 20, 32 << 20
    return 8 << 20, 64 << 20


# ---------------------------------------------------------------------------
# Generic residual add:  out = fn_out + x   (elementwise, HBM-bandwidth bound)
# ---------------------------------------------------------------------------
def _residual_add_kernel(fn_out_ref, x_ref, o_ref):
    o_ref[...] = fn_out_ref[...] + x_ref[...]


def _residual_add(fn_out, x):
    """Pallas-backed `fn_out + x` (used when fn_out is already materialized)."""
    if fn_out.shape != x.shape or fn_out.dtype != x.dtype:
        return fn_out + x  # keep the reference promotion/broadcast semantics

    total = int(x.size)
    lanes = 128
    if total == 0 or total % lanes != 0:
        # Review item: a wrapper-side pad of both inputs + slice of the output
        # is ~2x extra HBM traffic on a purely bandwidth-bound op.  For ragged
        # sizes just let XLA emit the fused add.
        return fn_out + x

    dtype = x.dtype
    itemsize = jnp.dtype(dtype).itemsize
    pack = max(8, 32 // itemsize)          # sublane packing: 8 f32 / 16 bf16 / 32 i8
    rows = total // lanes
    a = fn_out.reshape(rows, lanes)        # contiguous reshapes -> no data movement
    b = x.reshape(rows, lanes)

    block_budget, vmem_limit = _gen_aware_budgets()
    block_rows = max(pack, (block_budget // (lanes * itemsize)) // pack * pack)
    if rows > pack:
        # Guarantee >= 2 grid steps so dual-TensorCore parts (v7x) keep both
        # cores busy even on small/medium inputs.
        two_step = (-(-rows // 2) + pack - 1) // pack * pack
        block_rows = min(block_rows, two_step)
    else:
        block_rows = rows                  # tiny input: single full-extent block
    grid = (pl.cdiv(rows, block_rows),)

    out = pl.pallas_call(
        _residual_add_kernel,
        out_shape=jax.ShapeDtypeStruct((rows, lanes), dtype),
        grid=grid,
        in_specs=[
            pl.BlockSpec((block_rows, lanes), lambda i: (i, 0)),
            pl.BlockSpec((block_rows, lanes), lambda i: (i, 0)),
        ],
        out_specs=pl.BlockSpec((block_rows, lanes), lambda i: (i, 0)),
        # Reuse fn_out's buffer for the output -> no third full-size HBM alloc.
        input_output_aliases={0: 0},
        cost_estimate=pl.CostEstimate(
            flops=total, transcendentals=0, bytes_accessed=3 * total * itemsize),
        compiler_params=pltpu.CompilerParams(
            dimension_semantics=("parallel",),
            vmem_limit_bytes=vmem_limit,
        ),
    )(a, b)
    return out.reshape(x.shape)


# ---------------------------------------------------------------------------
# Fused 1x1-conv + residual:  out = einsum('oc,bchw->bohw', w, x) + x
# ---------------------------------------------------------------------------
def _fused_conv1x1_residual_smallc_kernel(w_ref, x_ref, o_ref):
    # w_ref: (C, C) f32 in SMEM.  x_ref / o_ref: (1, C, tr, 128) in VMEM.
    # Tiny channel count -> do the channel mix as C^2 scalar-broadcast FMAs on
    # the VPU over a fully lane/sublane-dense layout instead of a <4%-utilized
    # MXU matmul on a sublane-padded (C, t) block.
    C = x_ref.shape[1]
    xs = [x_ref[0, k].astype(jnp.float32) for k in range(C)]
    for c in range(C):
        acc = xs[c]                              # residual term
        for k in range(C):
            acc = acc + w_ref[c, k] * xs[k]
        o_ref[0, c] = acc.astype(o_ref.dtype)


def _fused_conv1x1_residual_mxu_kernel(w_ref, x_ref, o_ref):
    xb = x_ref[0]                                                    # (C, t)
    y = jnp.dot(w_ref[...], xb, preferred_element_type=jnp.float32)  # MXU
    o_ref[0] = (y + xb.astype(jnp.float32)).astype(o_ref.dtype)      # VPU add


def _pick_spatial_tile(hw, c, batch, itemsize, block_budget):
    """Largest 128-multiple tile whose x-block fits the per-operand budget."""
    if hw <= 128:
        return hw                                  # full extent is always legal
    c_pad = -(-c // 8) * 8                         # sublane-padded VMEM footprint
    t = (block_budget // (c_pad * itemsize)) // 128 * 128
    t = max(128, min(t, hw // 128 * 128))          # cdiv grid handles the ragged tail
    if batch == 1:
        # Batch axis can't feed the second TensorCore -> force >= 2 spatial steps.
        half = -(-hw // 2)
        t = min(t, max(128, -(-half // 128) * 128))
    return t


def _fused_conv1x1_residual(w, x):
    B, C, H, W = x.shape
    HW = H * W
    dtype = x.dtype
    itemsize = jnp.dtype(dtype).itemsize
    block_budget, vmem_limit = _gen_aware_budgets()

    if C < 8 and HW > 0 and HW % 128 == 0:
        # ---------------- small-C lane-dense VPU path ----------------
        rows_sp = HW // 128
        x4 = x.reshape(B, C, rows_sp, 128)          # free reshape
        if rows_sp <= 8:
            tr = rows_sp                            # full extent, always legal
        else:
            tr = max(8, (block_budget // (C * 128 * itemsize)) // 8 * 8)
            tr = min(tr, rows_sp // 8 * 8)
            if B == 1:
                half = -(-rows_sp // 2)
                tr = min(tr, max(8, -(-half // 8) * 8))
        grid = (B, pl.cdiv(rows_sp, tr))
        out = pl.pallas_call(
            _fused_conv1x1_residual_smallc_kernel,
            out_shape=jax.ShapeDtypeStruct((B, C, rows_sp, 128), dtype),
            grid=grid,
            in_specs=[
                pl.BlockSpec(memory_space=pltpu.MemorySpace.SMEM),   # (C, C) weights
                pl.BlockSpec((1, C, tr, 128), lambda b, j: (b, 0, j, 0)),
            ],
            out_specs=pl.BlockSpec((1, C, tr, 128), lambda b, j: (b, 0, j, 0)),
            cost_estimate=pl.CostEstimate(
                flops=B * HW * (2 * C * C + C), transcendentals=0,
                bytes_accessed=(2 * B * C * HW + C * C) * itemsize),
            compiler_params=pltpu.CompilerParams(
                dimension_semantics=("parallel", "parallel"),
                vmem_limit_bytes=vmem_limit,
            ),
        )(w.astype(jnp.float32), x4)
        return out.reshape(B, C, H, W)

    # ---------------- general path: MXU matmul + add, cdiv tiling ----------------
    x3 = x.reshape(B, C, HW)
    t = _pick_spatial_tile(HW, C, B, itemsize, block_budget)
    grid = (B, pl.cdiv(HW, t))
    # Note: w is cast to the activation dtype (bf16 inputs -> bf16 MXU-native
    # operands with f32 accumulation via preferred_element_type); this matches
    # within bf16 tolerances, exact for f32.
    out = pl.pallas_call(
        _fused_conv1x1_residual_mxu_kernel,
        out_shape=jax.ShapeDtypeStruct((B, C, HW), dtype),
        grid=grid,
        in_specs=[
            pl.BlockSpec((C, C), lambda b, j: (0, 0)),      # weights stay resident
            pl.BlockSpec((1, C, t), lambda b, j: (b, 0, j)),
        ],
        out_specs=pl.BlockSpec((1, C, t), lambda b, j: (b, 0, j)),
        cost_estimate=pl.CostEstimate(
            flops=2 * B * C * C * HW + B * C * HW, transcendentals=0,
            bytes_accessed=(2 * B * C * HW + C * C) * itemsize),
        compiler_params=pltpu.CompilerParams(
            dimension_semantics=("parallel", "parallel"),
            vmem_limit_bytes=vmem_limit,
        ),
    )(w.astype(dtype), x3)
    return out.reshape(B, C, H, W)


# ---------------------------------------------------------------------------
# Modules
# ---------------------------------------------------------------------------
class Conv1x1:
    """Deterministic 1x1 channel-mixing conv (the wrapped sub-module, glue).

    Exposes `fused_residual`, a single Pallas kernel computing fn(x) + x.
    """

    def __init__(self, w):
        self.w = w

    def __call__(self, x):
        return jnp.einsum("oc,bchw->bohw", self.w, x)

    def fused_residual(self, x):
        return _fused_conv1x1_residual(self.w, x)


class Residual:
    """JAX/Pallas port of the PyTorch Residual module: fn(x, ...) + x.

    pallas_add: "auto" (default)  -> Pallas add only if fn marks its output as
                                     already materialized (e.g. another Pallas
                                     kernel / custom call); otherwise plain
                                     `fn(x) + x` so XLA fuses the add into fn.
                "always"          -> always use the Pallas residual-add kernel.
                "never"           -> never use it.
    """

    def __init__(self, fn, *, pallas_add="auto"):
        self.fn = fn
        self.pallas_add = pallas_add

    def __call__(self, x, *args, **kwargs):
        fused = getattr(self.fn, "fused_residual", None)
        if fused is not None and not args and not kwargs:
            # fn + residual add fused into one Pallas kernel (no fn_out HBM trip).
            return fused(x)
        y = self.fn(x, *args, **kwargs)
        use_pallas = (
            self.pallas_add == "always"
            or (self.pallas_add == "auto"
                and getattr(self.fn, "materializes_output", False))
        )
        if use_pallas:
            return _residual_add(y, x)
        # Ordinary JAX fn: let XLA fuse `+ x` into fn's epilogue instead of
        # forcing fn_out through HBM into a standalone add kernel.
        return y + x


if __name__ == "__main__":
    key = jax.random.PRNGKey(0)
    kx, kw, kx2, kw2, kx3 = jax.random.split(key, 5)

    # 1) Small-C fused path (lane-dense VPU kernel, weights in SMEM).
    B, C, H, W = 2, 4, 16, 16
    x = jax.random.normal(kx, (B, C, H, W), dtype=jnp.float32)
    w = 0.1 * jax.random.normal(kw, (C, C), dtype=jnp.float32)
    conv = Conv1x1(w)
    ref = conv(x) + x
    y_fused = jax.block_until_ready(Residual(conv)(x))
    assert y_fused.shape == x.shape and y_fused.dtype == x.dtype
    assert jnp.allclose(y_fused, ref, atol=1e-5, rtol=1e-5)

    # 2) MXU fused path with ragged spatial size (cdiv tiling, C >= 8).
    B2, C2, H2, W2 = 2, 8, 16, 20   # H*W = 320: not a multiple of 128
    x2 = jax.random.normal(kx2, (B2, C2, H2, W2), dtype=jnp.float32)
    w2 = 0.1 * jax.random.normal(kw2, (C2, C2), dtype=jnp.float32)
    conv2 = Conv1x1(w2)
    ref2 = conv2(x2) + x2
    y2 = jax.block_until_ready(Residual(conv2)(x2))
    assert y2.shape == x2.shape and y2.dtype == x2.dtype
    assert jnp.allclose(y2, ref2, atol=1e-5, rtol=1e-5)

    # 3) Standalone Pallas residual-add kernel (fn_out treated as materialized).
    generic = Residual(lambda inp: jnp.einsum("oc,bchw->bohw", w, inp),
                       pallas_add="always")
    y_gen = jax.block_until_ready(generic(x))
    assert y_gen.shape == x.shape and y_gen.dtype == x.dtype
    assert jnp.allclose(y_gen, ref, atol=1e-5, rtol=1e-5)

    # 4) Odd-sized input: no wrapper-side pad/slice copies any more -- the add
    #    gracefully falls back to a plain fused XLA add for ragged sizes.
    x_odd = jax.random.normal(kx3, (2, 3, 5, 7), dtype=jnp.float32)
    odd = Residual(lambda inp: inp * 0.5, pallas_add="always")
    y_odd = jax.block_until_ready(odd(x_odd))
    assert y_odd.shape == x_odd.shape
    assert jnp.allclose(y_odd, x_odd * 1.5, atol=1e-5, rtol=1e-5)

    # 5) Default behaviour for an ordinary JAX fn: plain `fn(x) + x` (XLA fuses
    #    the add; no forced fn_out materialization).
    plain = Residual(lambda inp: inp * 2.0)
    y_plain = jax.block_until_ready(plain(x))
    assert jnp.allclose(y_plain, x * 3.0, atol=1e-5, rtol=1e-5)

    print("KERNEL_OK")
</pallas_src>

<mosaic_0001>
module attributes {stable_mosaic.version = 11 : i64} {
  func.func @_fused_conv1x1_residual_smallc_kernel(%arg0: i32, %arg1: i32, %arg2: memref<4x4xf32, #tpu.memory_space<smem>>, %arg3: memref<1x4x2x128xf32, #tpu.memory_space<vmem>>, %arg4: memref<1x4x2x128xf32, #tpu.memory_space<vmem>>) attributes {dimension_semantics = [#tpu.dimension_semantics<parallel>, #tpu.dimension_semantics<parallel>], iteration_bounds = array<i64: 2, 1>, scalar_prefetch = 0 : i64, scratch_operands = 0 : i64, tpu.core_type = #tpu.core_type<tc>, window_params = [{transform_indices = @transform_0, window_bounds = array<i64: 4, 4>}, {transform_indices = @transform_1, window_bounds = array<i64: 1, 4, 2, 128>}, {transform_indices = @transform_2, window_bounds = array<i64: 1, 4, 2, 128>}]} {
    %c0 = arith.constant 0 : index
    %c0_0 = arith.constant 0 : index
    %c0_1 = arith.constant 0 : index
    %c0_2 = arith.constant 0 : index
    %0 = vector.load %arg3[%c0, %c0_0, %c0_1, %c0_2] : memref<1x4x2x128xf32, #tpu.memory_space<vmem>>, vector<1x1x2x128xf32>
    %1 = vector.shape_cast %0 : vector<1x1x2x128xf32> to vector<2x128xf32>
    %c0_3 = arith.constant 0 : index
    %c1 = arith.constant 1 : index
    %c0_4 = arith.constant 0 : index
    %c0_5 = arith.constant 0 : index
    %2 = vector.load %arg3[%c0_3, %c1, %c0_4, %c0_5] : memref<1x4x2x128xf32, #tpu.memory_space<vmem>>, vector<1x1x2x128xf32>
    %3 = vector.shape_cast %2 : vector<1x1x2x128xf32> to vector<2x128xf32>
    %c0_6 = arith.constant 0 : index
    %c2 = arith.constant 2 : index
    %c0_7 = arith.constant 0 : index
    %c0_8 = arith.constant 0 : index
    %4 = vector.load %arg3[%c0_6, %c2, %c0_7, %c0_8] : memref<1x4x2x128xf32, #tpu.memory_space<vmem>>, vector<1x1x2x128xf32>
    %5 = vector.shape_cast %4 : vector<1x1x2x128xf32> to vector<2x128xf32>
    %c0_9 = arith.constant 0 : index
    %c3 = arith.constant 3 : index
    %c0_10 = arith.constant 0 : index
    %c0_11 = arith.constant 0 : index
    %6 = vector.load %arg3[%c0_9, %c3, %c0_10, %c0_11] : memref<1x4x2x128xf32, #tpu.memory_space<vmem>>, vector<1x1x2x128xf32>
    %7 = vector.shape_cast %6 : vector<1x1x2x128xf32> to vector<2x128xf32>
    %c0_12 = arith.constant 0 : index
    %c0_13 = arith.constant 0 : index
    %8 = memref.load %arg2[%c0_12, %c0_13] : memref<4x4xf32, #tpu.memory_space<smem>>
    %9 = vector.broadcast %8 : f32 to vector<2x128xf32>
    %10 = arith.mulf %9, %1 : vector<2x128xf32>
    %11 = arith.addf %1, %10 : vector<2x128xf32>
    %c0_14 = arith.constant 0 : index
    %c1_15 = arith.constant 1 : index
    %12 = memref.load %arg2[%c0_14, %c1_15] : memref<4x4xf32, #tpu.memory_space<smem>>
    %13 = vector.broadcast %12 : f32 to vector<2x128xf32>
    %14 = arith.mulf %13, %3 : vector<2x128xf32>
    %15 = arith.addf %11, %14 : vector<2x128xf32>
    %c0_16 = arith.constant 0 : index
    %c2_17 = arith.constant 2 : index
    %16 = memref.load %arg2[%c0_16, %c2_17] : memref<4x4xf32, #tpu.memory_space<smem>>
    %17 = vector.broadcast %16 : f32 to vector<2x128xf32>
    %18 = arith.mulf %17, %5 : vector<2x128xf32>
    %19 = arith.addf %15, %18 : vector<2x128xf32>
    %c0_18 = arith.constant 0 : index
    %c3_19 = arith.constant 3 : index
    %20 = memref.load %arg2[%c0_18, %c3_19] : memref<4x4xf32, #tpu.memory_space<smem>>
    %21 = vector.broadcast %20 : f32 to vector<2x128xf32>
    %22 = arith.mulf %21, %7 : vector<2x128xf32>
    %23 = arith.addf %19, %22 : vector<2x128xf32>
    %c0_20 = arith.constant 0 : index
    %c0_21 = arith.constant 0 : index
    %c0_22 = arith.constant 0 : index
    %c0_23 = arith.constant 0 : index
    %24 = vector.load %arg4[%c0_20, %c0_21, %c0_22, %c0_23] : memref<1x4x2x128xf32, #tpu.memory_space<vmem>>, vector<1x1x2x128xf32>
    %25 = vector.shape_cast %24 : vector<1x1x2x128xf32> to vector<2x128xf32>
    %26 = vector.shape_cast %23 : vector<2x128xf32> to vector<1x1x2x128xf32>
    tpu.vector_store %arg4[%c0_20, %c0_21, %c0_22, %c0_23], %26 {strides = array<i32>} : memref<1x4x2x128xf32, #tpu.memory_space<vmem>>, vector<1x1x2x128xf32>,
    %c1_24 = arith.constant 1 : index
    %c0_25 = arith.constant 0 : index
    %27 = memref.load %arg2[%c1_24, %c0_25] : memref<4x4xf32, #tpu.memory_space<smem>>
    %28 = vector.broadcast %27 : f32 to vector<2x128xf32>
    %29 = arith.mulf %28, %1 : vector<2x128xf32>
    %30 = arith.addf %3, %29 : vector<2x128xf32>
    %c1_26 = arith.constant 1 : index
    %c1_27 = arith.constant 1 : index
    %31 = memref.load %arg2[%c1_26, %c1_27] : memref<4x4xf32, #tpu.memory_space<smem>>
    %32 = vector.broadcast %31 : f32 to vector<2x128xf32>
    %33 = arith.mulf %32, %3 : vector<2x128xf32>
    %34 = arith.addf %30, %33 : vector<2x128xf32>
    %c1_28 = arith.constant 1 : index
    %c2_29 = arith.constant 2 : index
    %35 = memref.load %arg2[%c1_28, %c2_29] : memref<4x4xf32, #tpu.memory_space<smem>>
    %36 = vector.broadcast %35 : f32 to vector<2x128xf32>
    %37 = arith.mulf %36, %5 : vector<2x128xf32>
    %38 = arith.addf %34, %37 : vector<2x128xf32>
    %c1_30 = arith.constant 1 : index
    %c3_31 = arith.constant 3 : index
    %39 = memref.load %arg2[%c1_30, %c3_31] : memref<4x4xf32, #tpu.memory_space<smem>>
    %40 = vector.broadcast %39 : f32 to vector<2x128xf32>
    %41 = arith.mulf %40, %7 : vector<2x128xf32>
    %42 = arith.addf %38, %41 : vector<2x128xf32>
    %c0_32 = arith.constant 0 : index
    %c1_33 = arith.constant 1 : index
    %c0_34 = arith.constant 0 : index
    %c0_35 = arith.constant 0 : index
    %43 = vector.load %arg4[%c0_32, %c1_33, %c0_34, %c0_35] : memref<1x4x2x128xf32, #tpu.memory_space<vmem>>, vector<1x1x2x128xf32>
    %44 = vector.shape_cast %43 : vector<1x1x2x128xf32> to vector<2x128xf32>
    %45 = vector.shape_cast %42 : vector<2x128xf32> to vector<1x1x2x128xf32>
    tpu.vector_store %arg4[%c0_32, %c1_33, %c0_34, %c0_35], %45 {strides = array<i32>} : memref<1x4x2x128xf32, #tpu.memory_space<vmem>>, vector<1x1x2x128xf32>,
    %c2_36 = arith.constant 2 : index
    %c0_37 = arith.constant 0 : index
    %46 = memref.load %arg2[%c2_36, %c0_37] : memref<4x4xf32, #tpu.memory_space<smem>>
    %47 = vector.broadcast %46 : f32 to vector<2x128xf32>
    %48 = arith.mulf %47, %1 : vector<2x128xf32>
    %49 = arith.addf %5, %48 : vector<2x128xf32>
    %c2_38 = arith.constant 2 : index
    %c1_39 = arith.constant 1 : index
    %50 = memref.load %arg2[%c2_38, %c1_39] : memref<4x4xf32, #tpu.memory_space<smem>>
    %51 = vector.broadcast %50 : f32 to vector<2x128xf32>
    %52 = arith.mulf %51, %3 : vector<2x128xf32>
    %53 = arith.addf %49, %52 : vector<2x128xf32>
    %c2_40 = arith.constant 2 : index
    %c2_41 = arith.constant 2 : index
    %54 = memref.load %arg2[%c2_40, %c2_41] : memref<4x4xf32, #tpu.memory_space<smem>>
    %55 = vector.broadcast %54 : f32 to vector<2x128xf32>
    %56 = arith.mulf %55, %5 : vector<2x128xf32>
    %57 = arith.addf %53, %56 : vector<2x128xf32>
    %c2_42 = arith.constant 2 : index
    %c3_43 = arith.constant 3 : index
    %58 = memref.load %arg2[%c2_42, %c3_43] : memref<4x4xf32, #tpu.memory_space<smem>>
    %59 = vector.broadcast %58 : f32 to vector<2x128xf32>
    %60 = arith.mulf %59, %7 : vector<2x128xf32>
    %61 = arith.addf %57, %60 : vector<2x128xf32>
    %c0_44 = arith.constant 0 : index
    %c2_45 = arith.constant 2 : index
    %c0_46 = arith.constant 0 : index
    %c0_47 = arith.constant 0 : index
    %62 = vector.load %arg4[%c0_44, %c2_45, %c0_46, %c0_47] : memref<1x4x2x128xf32, #tpu.memory_space<vmem>>, vector<1x1x2x128xf32>
    %63 = vector.shape_cast %62 : vector<1x1x2x128xf32> to vector<2x128xf32>
    %64 = vector.shape_cast %61 : vector<2x128xf32> to vector<1x1x2x128xf32>
    tpu.vector_store %arg4[%c0_44, %c2_45, %c0_46, %c0_47], %64 {strides = array<i32>} : memref<1x4x2x128xf32, #tpu.memory_space<vmem>>, vector<1x1x2x128xf32>,
    %c3_48 = arith.constant 3 : index
    %c0_49 = arith.constant 0 : index
    %65 = memref.load %arg2[%c3_48, %c0_49] : memref<4x4xf32, #tpu.memory_space<smem>>
    %66 = vector.broadcast %65 : f32 to vector<2x128xf32>
    %67 = arith.mulf %66, %1 : vector<2x128xf32>
    %68 = arith.addf %7, %67 : vector<2x128xf32>
    %c3_50 = arith.constant 3 : index
    %c1_51 = arith.constant 1 : index
    %69 = memref.load %arg2[%c3_50, %c1_51] : memref<4x4xf32, #tpu.memory_space<smem>>
    %70 = vector.broadcast %69 : f32 to vector<2x128xf32>
    %71 = arith.mulf %70, %3 : vector<2x128xf32>
    %72 = arith.addf %68, %71 : vector<2x128xf32>
    %c3_52 = arith.constant 3 : index
    %c2_53 = arith.constant 2 : index
    %73 = memref.load %arg2[%c3_52, %c2_53] : memref<4x4xf32, #tpu.memory_space<smem>>
    %74 = vector.broadcast %73 : f32 to vector<2x128xf32>
    %75 = arith.mulf %74, %5 : vector<2x128xf32>
    %76 = arith.addf %72, %75 : vector<2x128xf32>
    %c3_54 = arith.constant 3 : index
    %c3_55 = arith.constant 3 : index
    %77 = memref.load %arg2[%c3_54, %c3_55] : memref<4x4xf32, #tpu.memory_space<smem>>
    %78 = vector.broadcast %77 : f32 to vector<2x128xf32>
    %79 = arith.mulf %78, %7 : vector<2x128xf32>
    %80 = arith.addf %76, %79 : vector<2x128xf32>
    %c0_56 = arith.constant 0 : index
    %c3_57 = arith.constant 3 : index
    %c0_58 = arith.constant 0 : index
    %c0_59 = arith.constant 0 : index
    %81 = vector.load %arg4[%c0_56, %c3_57, %c0_58, %c0_59] : memref<1x4x2x128xf32, #tpu.memory_space<vmem>>, vector<1x1x2x128xf32>
    %82 = vector.shape_cast %81 : vector<1x1x2x128xf32> to vector<2x128xf32>
    %83 = vector.shape_cast %80 : vector<2x128xf32> to vector<1x1x2x128xf32>
    tpu.vector_store %arg4[%c0_56, %c3_57, %c0_58, %c0_59], %83 {strides = array<i32>} : memref<1x4x2x128xf32, #tpu.memory_space<vmem>>, vector<1x1x2x128xf32>,
    return
  }
  func.func @transform_0(%arg0: i32, %arg1: i32) -> (i32, i32) {
    %c0_i32 = arith.constant 0 : i32
    %c0_i32_0 = arith.constant 0 : i32
    %c0_i32_1 = arith.constant 0 : i32
    return %c0_i32, %c0_i32_0 : i32, i32
  }
  func.func @transform_1(%arg0: i32, %arg1: i32) -> (i32, i32, i32, i32) {
    %c0_i32 = arith.constant 0 : i32
    %c0_i32_0 = arith.constant 0 : i32
    %c0_i32_1 = arith.constant 0 : i32
    return %arg0, %c0_i32, %arg1, %c0_i32_0 : i32, i32, i32, i32
  }
  func.func @transform_2(%arg0: i32, %arg1: i32) -> (i32, i32, i32, i32) {
    %c0_i32 = arith.constant 0 : i32
    %c0_i32_0 = arith.constant 0 : i32
    %c0_i32_1 = arith.constant 0 : i32
    return %arg0, %c0_i32, %arg1, %c0_i32_0 : i32, i32, i32, i32
  }
}

</mosaic_0001>

<bundles_post_ra>
// kernel: tpu_custom_call.1
= control target key start
LH: loop header
LB: loop body
LE: loop exit
PB: predicated region body
PF: predicated region fallthrough
CT: control target
= control target key end

     0   :  { %7 = vsyncpa [#allocation5], 0  ;;  %s880_s0 = inlined_call_operand.hbm [shape: f32[4,4], index: 0, kind: input, shape index: {}]   ;;  %s881_s1 = inlined_call_operand.hbm [shape: f32[2,4,2,128], index: 1, kind: input, shape index: {}]   ;;  %s882_s2 = inlined_call_operand.hbm [shape: f32[2,4,2,128], index: 2, kind: output, shape index: {}]  }
   0x1   :  { %8 = vsyncpa [#allocation3], 0 }
   0x2   :  { %10 = vsyncpa [#allocation3 + $0x1], 0 }
   0x3   :  { %11 = vsyncpa [#allocation4], 0 }
   0x4   :  { %13 = vsyncpa [#allocation4 + $0x1], 0  ;;  %s651_s9 = smov 0   ;;  %s653_s10 = smov 0  }
   0x5   :  { %s655_s11 = smov 0   ;;  %s657_s12 = smov 0  }
   0x6   :  { %s659_s13 = smov 0   ;;  %s661_s14 = smov 0  }
   0x7 LB: > { %s381_s15 = sadd.s32 4294967295, %s627_s14   ;;  %s382_s16 = sadd.s32 4294967294, %s627_s14   ;;  %s627_s14 = sphi %s661_s14, %s19_s14   ;;  %s623_s13 = sphi %s659_s13, %s902_s13   ;;  %s619_s12 = sphi %s657_s12, %s901_s12   ;;  %s615_s11 = sphi %s655_s11, %s900_s11   ;;  %s611_s10 = sphi %s653_s10, %s899_s10   ;;  %s607_s9 = sphi %s651_s9, %s898_s9  }
   0x8   : > { %s61_s17 = sadd.s32 1, %s615_s11  ;;  %p68_p0 = scmp.ne.s32.totalorder %s615_s11, %s611_s10 }
   0x9   : > { %p69_p1 = scmp.eq.s32.totalorder %s627_s14, 0  ;;  %p74_p2 = scmp.ne.s32.totalorder %s611_s10, %s607_s9 }
   0xa   : > { %p689_p3 = scmp.eq.s32.totalorder %s381_s15, 0  ;;  %p100_p4 = scmp.eq.s32.totalorder %s381_s15, 1 }
   0xb   : > { %p70_p5 = por %p69_p1, %p68_p0  ;;  %p106_p6 = scmp.eq.s32.totalorder %s382_s16, 1 }
   0xc   : > { %s887_s18 = scalar_select %p689_p3, 1, 0 }
   0xd   : > { %p695_p7 = por %p689_p3, %p74_p2  ;;  %p699_p8 = por %p100_p4, %p68_p0 }
   0xe   : > { %p703_p9 = por %p106_p6, %p74_p2  ;;  %p383_p10 = scmp.ge.s32.totalorder %s627_s14, 1 }
   0xf   : > { %s888_s19 = scalar_select %p695_p7, 1, 0 }
  0x10   : > { %s889_s20 = scalar_select %p699_p8, 1, 0 }
  0x11   : > { %s890_s21 = scalar_select %p703_p9, 1, 0 }
  0x12   : > { %p113_p11 = scmp.lt.s32.totalorder %s627_s14, 3  ;;  %p442_p1 = scmp.lt.s32.totalorder %s627_s14, 2 }
  0x13   : > { %s135_s23 = sand.u32 1, %s615_s11   ;;  %s31_s25 = sadd.s32 1, %s623_s13 }
  0x14   : > { %p710_p13 = pnand %p383_p10, %p113_p11  ;;  %p718_p0 = pnand %p442_p1, %p70_p5 }
  0x15   : > { %s386_s26 = sshll.u32 %s135_s23, 3  ;;  %p33_p4 = scmp.ge.s32.totalorder %s31_s25, 2 }
  0x16   : > { %p429_p7 = pneg %p710_p13  ;;  %s498_s29 = scalar_lea.hbm %s880_s0, 64 }
  0x17   : > { %p499_p6 = scmp.ne.s32.totalorder %s880_s0, %s498_s29  ;;  %p505_p5 = scmp.lt.u32.totalorder %s498_s29, %s880_s0 }
  0x18   : > { %p430_p2 = pnand %p429_p7, %p689_p3 }
  0x1a   : > { %p500_p10 = pneg %p430_p2 }
  0x1c   : > { %p501_p11 = pnand %p500_p10, %p499_p6 }
  0x1e   : > { %p502_p12 = pneg %p501_p11 }
  0x20   : > { %p507_p1 = pnand %p505_p5, %p502_p12 }
  0x22   : > { %510 = shalt.err (!%p507_p1)
}
  0x23   : > { %s629_s6 = smov [#allocation2]   ;;  %s904_s25 = smov (%p33_p4, %s31_s25), 0 }
  0x24   : > { %432 = dma.hbm_to_smem (!%p430_p2), %s880_s0, 64, %s629_s6, [#allocation5]  }
  0x25   : > { %s419_s15 = sshll.u32 %s623_s13, 7  ;;  %s56_s16 = ssub.s32 %s623_s13, %s904_s25 }
  0x26   : > { %s745_s29 = scalar_lea.hbm %s881_s1, %s419_s15  ;;  %p59_p7 = scmp.eq.s32.totalorder %s56_s16, 0 }
  0x27   : > { %s139_s30 = scalar_lea.vmem [#allocation6], %s386_s26  ;;  %s754_s5 = scalar_lea.sflag [#allocation3], %s135_s23 }
  0x28   : > { %s147_s3 = sshll.u32 %s139_s30, 4  ;;  %s511_s6 = scalar_lea.hbm %s745_s29, 128  ;;  %s747_s3 = int_to_ptr.vmem [resolvable:$true] %s147_s3 }
  0x29   : > { %s752_s4 = scalar_select %p59_p7, %s615_s11, %s61_s17  }
  0x2a   : > { %p512_p12 = scmp.ne.s32.totalorder %s745_s29, %s511_s6  ;;  %p513_p2 = pneg %p718_p0 }
  0x2b   : > { %s516_s26 = scalar_lea.hbm %s881_s1, 256  ;;  %p517_p10 = scmp.lt.u32.totalorder %s745_s29, %s881_s1 }
  0x2c   : > { %p514_p4 = pnand %p513_p2, %p512_p12  ;;  %p518_p11 = scmp.lt.u32.totalorder %s516_s26, %s511_s6 }
  0x2d   : > { %p520_p1 = scmp.lt.u32.totalorder %s511_s6, %s745_s29 }
  0x2e   : > { %p515_p6 = pneg %p514_p4  ;;  %p519_p5 = por %p518_p11, %p517_p10 }
  0x30   : > { %p521_p7 = por %p520_p1, %p519_p5 }
  0x32   : > { %p522_p9 = pnand %p521_p7, %p515_p6 }
  0x34   : > { %525 = shalt.err (!%p522_p9)
}
  0x35   : > { %s526_s17 = scalar_lea.vmem %s747_s3, 128  ;;  %s630_s23 = smov [#allocation6]  }
  0x36   : > { %p527_p12 = scmp.ne.s32.totalorder %s747_s3, %s526_s17  ;;  %s531_s27 = sshll.u32 %s630_s23, 4  ;;  %s532_s27 = int_to_ptr.vmem [resolvable:$false] %s531_s27 }
  0x37   : > { %s533_s28 = scalar_lea.vmem %s532_s27, 256  ;;  %p534_p3 = scmp.lt.s32.totalorder %s747_s3, %s532_s27 }
  0x38   : > { %p529_p4 = pnand %p527_p12, %p513_p2  ;;  %p535_p10 = scmp.lt.s32.totalorder %s533_s28, %s526_s17 }
  0x3a   : > { %p530_p8 = pneg %p529_p4  ;;  %p536_p11 = por %p535_p10, %p534_p3 }
  0x3c   : > { %p537_p5 = pnand %p536_p11, %p530_p8 }
  0x3e   : > { %540 = shalt.err (!%p537_p5)
}
  0x3f   : > { %s631_s30 = smov 32   ;;  %s632_s6 = smov 2  }
  0x40   : > { %436 = dma.hbm_to_vmem [thread:$0]  (!%p718_p0), %s745_s29, 128, %s747_s3, %s754_s5, %s631_s30, %s631_s30, %s632_s6  }
  0x41   : > { %159 = sbr.rel (%p710_p13) target bundleno = 118 (0x76), region = 28  ;;  %p893_p9 = scmp.ne.s32.totalorder (!%p710_p13), %s887_s18, 0 }
  0x48   : > { %594 = dma.done.wait (%p893_p9), [#allocation5], 64  }
  0x49   : > { %596 = vsyncadd (%p893_p9), [#allocation5], 4294967232  ;;  %s789_s7 = sand.u32 1, %s611_s10   ;;  %p894_p3 = scmp.ne.s32.totalorder %s888_s19, 0 }
  0x4a   : > { %s391_s8 = sshll.u32 %s789_s7, 3  ;;  %s166_s26 = scalar_lea.sflag [#allocation3], %s789_s7 }
  0x4b   : > { %s169_s24 = scalar_lea.vmem [#allocation6], %s391_s8 }
  0x4c   : > { %598 = dma.done.wait (%p894_p3), %s166_s26, 128  }
  0x4d   : > { %600 = vsyncadd (%p894_p3), %s166_s26, 4294967168 }
  0x4e   : > { %174 = sfence }
  0x4f   : > { %s198_s22 = sld [smem:[#allocation2]]  ;;  %s396_s18 = sld [smem:[#allocation2 + $0x1]]  ;;  %v191_v0 = vld [vmem:[%s169_s24] sm:$0x3]  ;;  %v393_v1 = vld [vmem:[%s169_s24 + $0x2] sm:$0x3] }
  0x50   : > { %s397_s29 = sld [smem:[#allocation2 + $0x2]]  ;;  %s398_s3 = sld [smem:[#allocation2 + $0x3]]  ;;  %v394_v6 = vld [vmem:[%s169_s24 + $0x4] sm:$0x3]  ;;  %v395_v9 = vld [vmem:[%s169_s24 + $0x6] sm:$0x3] }
  0x51   : > { %s399_s5 = sld [smem:[#allocation2 + $0x80]]  ;;  %s400_s15 = sld [smem:[#allocation2 + $0x81]] }
  0x52   : > { %s401_s16 = sld [smem:[#allocation2 + $0x82]]  ;;  %s402_s17 = sld [smem:[#allocation2 + $0x83]] }
  0x53   : > { %s799_s23 = sld [smem:[#allocation2 + $0x100]]  ;;  %s801_s27 = sld [smem:[#allocation2 + $0x101]] }
  0x54   : > { %s803_s28 = sld [smem:[#allocation2 + $0x102]]  ;;  %s805_s19 = sld [smem:[#allocation2 + $0x103]] }
  0x55   : > { %v199_v2 = vstv %s198_s22  ;;  %v203_v4 = vstv %s396_s18  ;;  %s807_s30 = sld [smem:[#allocation2 + $0x180]]  ;;  %s809_s6 = sld [smem:[#allocation2 + $0x181]] }
  0x56   : > { %v200_v3 = vmul.f32 %v199_v2, %v191_v0  ;;  %v207_v5 = vstv %s397_s29  ;;  %v204_v7 = vmul.f32 %v393_v1, %v203_v4  ;;  %v211_v8 = vstv %s398_s3  ;;  %s811_s26 = sld [smem:[#allocation2 + $0x182]]  ;;  %s813_s22 = sld [smem:[#allocation2 + $0x183]] }
  0x57   : > { %v208_v11 = vmul.f32 %v394_v6, %v207_v5  ;;  %v216_v12 = vstv %s399_s5  ;;  %v212_v13 = vmul.f32 %v395_v9, %v211_v8  ;;  %v220_v15 = vstv %s400_s15  ;;  %s190_s24 = scalar_lea.vmem [#allocation7], %s391_s8  ;;  %s420_s29 = sshll.u32 %s619_s12, 7 }
  0x58   : > { %v201_v10 = vadd.f32 %v200_v3, %v191_v0  ;;  %v217_v14 = vmul.f32 %v216_v12, %v191_v0  ;;  %v224_v16 = vstv %s401_s16  ;;  %v221_v18 = vmul.f32 %v393_v1, %v220_v15  ;;  %s284_s18 = sshll.u32 %s190_s24, 4  ;;  %s831_s5 = scalar_lea.hbm %s882_s2, %s420_s29  ;;  %s826_s18 = int_to_ptr.vmem [resolvable:$true] %s284_s18 }
  0x59   : > { %v225_v19 = vmul.f32 %v394_v6, %v224_v16  ;;  %v228_v20 = vstv %s402_s17  ;;  %v234_v23 = vstv %s799_s23  ;;  %v238_v24 = vstv %s801_s27  ;;  %s270_s15 = scalar_lea.sflag [#allocation4], %s789_s7  ;;  %s541_s16 = scalar_lea.vmem %s826_s18, 128 }
  0x5a   : > { %v205_v17 = vadd.f32 %v204_v7, %v201_v10  ;;  %v218_v21 = vadd.f32 %v393_v1, %v217_v14  ;;  %v229_v22 = vmul.f32 %v395_v9, %v228_v20  ;;  %v235_v26 = vmul.f32 %v234_v23, %v191_v0  ;;  %p542_p8 = scmp.ne.s32.totalorder %s826_s18, %s541_s16  ;;  %p895_p13 = scmp.ne.s32.totalorder %s889_s20, 0 }
  0x5b   : > { %v239_v27 = vmul.f32 %v393_v1, %v238_v24  ;;  %v242_v28 = vstv %s803_s28  ;;  %v246_v31 = vstv %s805_s19  ;;  %v252_v32 = vstv %s807_s30  ;;  %s633_s12 = smov [#allocation7]  }
  0x5c   : > { %v209_v25 = vadd.f32 %v208_v11, %v205_v17  ;;  %v222_v29 = vadd.f32 %v221_v18, %v218_v21  ;;  %v243_v30 = vmul.f32 %v394_v6, %v242_v28  ;;  %v236_v34 = vadd.f32 %v394_v6, %v235_v26  ;;  %p543_p0 = pnand %p542_p8, %p895_p13  ;;  %s545_s17 = sshll.u32 %s633_s12, 4  ;;  %s546_s17 = int_to_ptr.vmem [resolvable:$false] %s545_s17 }
  0x5d   : > { %v247_v35 = vmul.f32 %v395_v9, %v246_v31  ;;  %v253_v36 = vmul.f32 %v252_v32, %v191_v0  ;;  %v256_v38 = vstv %s809_s6  ;;  %v260_v39 = vstv %s811_s26  ;;  %s547_s23 = scalar_lea.vmem %s546_s17, 256  ;;  %p548_p6 = scmp.lt.s32.totalorder %s826_s18, %s546_s17 }
  0x5e   : > { %v213_v33 = vadd.f32 %v212_v13, %v209_v25  ;;  %v226_v37 = vadd.f32 %v225_v19, %v222_v29  ;;  %v264_v40 = vstv %s813_s22  ;;  %v240_v41 = vadd.f32 %v239_v27, %v236_v34  ;;  %p544_p2 = pneg %p543_p0  ;;  %p549_p1 = scmp.lt.s32.totalorder %s547_s23, %s541_s16 }
  0x5f   : > { %v254_v42 = vadd.f32 %v395_v9, %v253_v36  ;;  %v257_v43 = vmul.f32 %v393_v1, %v256_v38  ;;  %v261_v44 = vmul.f32 %v394_v6, %v260_v39  ;;  %v265_v48 = vmul.f32 %v395_v9, %v264_v40 }
  0x60   : > { %214 = vst [vmem:[%s190_s24] sm:$0x3] %v213_v33  ;;  %v230_v45 = vadd.f32 %v229_v22, %v226_v37  ;;  %v244_v46 = vadd.f32 %v243_v30, %v240_v41  ;;  %p550_p7 = por %p549_p1, %p548_p6 }
  0x61   : > { %v258_v47 = vadd.f32 %v257_v43, %v254_v42 }
  0x62   : > { %403 = vst [vmem:[%s190_s24 + $0x2] sm:$0x3] %v230_v45  ;;  %v248_v49 = vadd.f32 %v247_v35, %v244_v46  ;;  %p551_p12 = pnand %p550_p7, %p544_p2 }
  0x63   : > { %v262_v50 = vadd.f32 %v261_v44, %v258_v47 }
  0x64   : > { %408 = vst [vmem:[%s190_s24 + $0x4] sm:$0x3] %v248_v49 }
  0x65   : > { %v266_v51 = vadd.f32 %v265_v48, %v262_v50 }
  0x67   : > { %413 = vst [vmem:[%s190_s24 + $0x6] sm:$0x3] %v266_v51 }
  0x68   : > { %554 = shalt.err (!%p551_p12)
}
  0x69   : > { %s555_s27 = scalar_lea.hbm %s831_s5, 128  ;;  %s559_s30 = scalar_lea.hbm %s882_s2, 256 }
  0x6a   : > { %p556_p4 = scmp.ne.s32.totalorder %s831_s5, %s555_s27  ;;  %p560_p5 = scmp.lt.u32.totalorder %s831_s5, %s882_s2 }
  0x6b   : > { %p561_p9 = scmp.lt.u32.totalorder %s559_s30, %s555_s27  ;;  %p563_p8 = scmp.lt.u32.totalorder %s555_s27, %s831_s5 }
  0x6c   : > { %p557_p10 = pnand %p556_p4, %p895_p13 }
  0x6d   : > { %p562_p3 = por %p561_p9, %p560_p5 }
  0x6e   : > { %p558_p11 = pneg %p557_p10 }
  0x6f   : > { %p564_p0 = por %p563_p8, %p562_p3 }
  0x71   : > { %p565_p2 = pnand %p564_p0, %p558_p11 }
  0x73   : > { %568 = shalt.err (!%p565_p2)
}
  0x74   : > { %s634_s22 = smov 32   ;;  %s635_s24 = smov 2  }
  0x75   : > { %427 = dma.vmem_to_hbm [thread:$0]  (%p895_p13), %s826_s18, 128, %s831_s5, %s270_s15, %s634_s22, %s634_s22, %s635_s24  }
  0x76 PF: > { %s299_s29 = sand.u32 1, %s607_s9   ;;  %p896_p6 = scmp.ne.s32.totalorder %s890_s21, 0 }
  0x77   : > { %p897_p1 = scmp.ge.s32.totalorder %s627_s14, 2  ;;  %s300_s3 = scalar_lea.sflag [#allocation4], %s299_s29 }
  0x79   : > { %p438_p7 = pnand %p897_p1, %p896_p6 }
  0x7b   : > { %602 = dma.done.wait (!%p438_p7), %s300_s3, 128  }
  0x7c   : > { %604 = vsyncadd (!%p438_p7), %s300_s3, 4294967168  ;;  %s19_s14 = sadd.s32 1, %s627_s14   ;;  %s898_s9 = smov %s611_s10 }
  0x7d   : > { %p16_p12 = scmp.ge.s32.totalorder %s19_s14, 4   ;;  %s899_s10 = smov %s615_s11 }
  0x7e   : > { %s900_s11 = smov %s752_s4  ;;  %s901_s12 = smov %s623_s13 }
  0x7f   : > { %s902_s13 = smov %s904_s25  ;;  %18 = sbr.rel (!%p16_p12) target bundleno = 7 (0x7), region = 84 }
  0x86   :  { %305 = vsyncpa [#allocation3], 1 }
  0x87   :  { %307 = vsyncpa [#allocation3 + $0x1], 1 }
  0x88   :  { %308 = vsyncpa [#allocation4], 1 }
  0x89   :  { %310 = vsyncpa [#allocation4 + $0x1], 1 }
  0x8a   :  { %311 = vsyncpa [#allocation5], 1 }
  0x8b   :  { %313 = vsyncpa [#allocation5 + $0x1], 1 }

</bundles_post_ra>
